<compile_context>
chip_gen: v6e
topology: v6e:2x2x1
jax: 0.10.0
libtpu: 0.0.40
codegen_flags: <defaults>
</compile_context>

<pallas_src>
import functools

import jax
import jax.numpy as jnp
from jax import lax
from jax.experimental import pallas as pl
from jax.experimental.pallas import tpu as pltpu


def _round_up(a: int, b: int) -> int:
    return (a + b - 1) // b * b


def _prenorm_ffn_kernel(x_ref, g_ref, beta_ref, w1_ref, b1_ref, w2_ref, b2_ref,
                        o_ref, *, dim_true: int, eps: float):
    # x_ref: (TM, Dp)   g_ref/beta_ref: (1, Dp)
    # w1_ref: (Dp, Hp)  b1_ref: (1, Hp)
    # w2_ref: (Hp, Dp)  b2_ref: (1, Dp)   o_ref: (TM, Dp)
    x = x_ref[...].astype(jnp.float32)

    # ---- LayerNorm over the (true) last dim, f32 math ------------------------
    # Padded feature lanes are zero, so plain sums divided by dim_true are the
    # correct statistics; padded gamma/beta are zero so padded lanes of x_norm
    # come out exactly zero and contribute nothing to the first matmul.
    inv_d = 1.0 / float(dim_true)
    mean = jnp.sum(x, axis=-1, keepdims=True) * inv_d
    var = jnp.sum(x * x, axis=-1, keepdims=True) * inv_d - mean * mean
    x_hat = (x - mean) * lax.rsqrt(var + eps)
    x_norm = x_hat * g_ref[...].astype(jnp.float32) + beta_ref[...].astype(jnp.float32)

    # ---- Linear 1 (MXU, f32 accumulation) ------------------------------------
    h = jnp.dot(x_norm.astype(w1_ref.dtype), w1_ref[...],
                preferred_element_type=jnp.float32) + b1_ref[...].astype(jnp.float32)

    # ---- SiLU: h * sigmoid(h); exp + approx reciprocal live on the EUP -------
    s = pl.reciprocal(1.0 + jnp.exp(-h), approx=True)
    h = h * s
    # Dropout(p=0.0) is the identity in eval -> nothing to do.

    # ---- Linear 2 (MXU, f32 accumulation) ------------------------------------
    y = jnp.dot(h.astype(w2_ref.dtype), w2_ref[...],
                preferred_element_type=jnp.float32) + b2_ref[...].astype(jnp.float32)

    o_ref[...] = y.astype(o_ref.dtype)


@functools.partial(jax.jit, static_argnames=("tile_m", "eps"))
def pre_norm_feed_forward(x, gamma, beta, w1, b1, w2, b2, *, tile_m=256, eps=1e-5):
    """PreNorm(dim, FeedForward): LayerNorm(x) -> Linear -> SiLU -> Linear.

    x: (B, N, dim); gamma/beta: (dim,); w1: (dim, hidden); b1: (hidden,);
    w2: (hidden, dim); b2: (dim,). Returns (B, N, dim).
    """
    B, N, dim = x.shape
    hidden = w1.shape[1]
    M = B * N

    # Lane-dense feature dims (multiples of 128); sublane-aligned row tile.
    dim_p = _round_up(dim, 128)
    hid_p = _round_up(hidden, 128)
    tile_m_eff = min(_round_up(tile_m, 8), _round_up(M, 8))
    M_p = _round_up(M, tile_m_eff)

    # Zero-pad rows and features (see kernel comments on why this is exact).
    x2d = jnp.pad(x.reshape(M, dim), ((0, M_p - M), (0, dim_p - dim)))
    g_p = jnp.pad(gamma, (0, dim_p - dim)).reshape(1, dim_p)
    be_p = jnp.pad(beta, (0, dim_p - dim)).reshape(1, dim_p)
    w1_p = jnp.pad(w1, ((0, dim_p - dim), (0, hid_p - hidden)))
    b1_p = jnp.pad(b1.reshape(-1), (0, hid_p - hidden)).reshape(1, hid_p)
    w2_p = jnp.pad(w2, ((0, hid_p - hidden), (0, dim_p - dim)))
    b2_p = jnp.pad(b2.reshape(-1), (0, dim_p - dim)).reshape(1, dim_p)

    grid = (M_p // tile_m_eff,)
    itemsize = jnp.dtype(x.dtype).itemsize
    cost = pl.CostEstimate(
        flops=4 * M_p * dim_p * hid_p,          # two matmuls, 2 flops / MAC
        transcendentals=M_p * hid_p,            # exp in SiLU
        bytes_accessed=itemsize * (2 * M_p * dim_p + 2 * dim_p * hid_p
                                   + hid_p + 3 * dim_p),
    )

    kernel = functools.partial(_prenorm_ffn_kernel, dim_true=dim, eps=float(eps))

    out2d = pl.pallas_call(
        kernel,
        out_shape=jax.ShapeDtypeStruct((M_p, dim_p), x.dtype),
        grid_spec=pltpu.PrefetchScalarGridSpec(
            num_scalar_prefetch=0,
            grid=grid,
            in_specs=[
                pl.BlockSpec((tile_m_eff, dim_p), lambda i: (i, 0)),  # x rows
                pl.BlockSpec((1, dim_p), lambda i: (0, 0)),           # gamma
                pl.BlockSpec((1, dim_p), lambda i: (0, 0)),           # beta
                pl.BlockSpec((dim_p, hid_p), lambda i: (0, 0)),       # W1 (resident)
                pl.BlockSpec((1, hid_p), lambda i: (0, 0)),           # b1
                pl.BlockSpec((hid_p, dim_p), lambda i: (0, 0)),       # W2 (resident)
                pl.BlockSpec((1, dim_p), lambda i: (0, 0)),           # b2
            ],
            out_specs=pl.BlockSpec((tile_m_eff, dim_p), lambda i: (i, 0)),
        ),
        compiler_params=pltpu.CompilerParams(
            dimension_semantics=("parallel",),
        ),
        cost_estimate=cost,
    )(x2d, g_p, be_p, w1_p, b1_p, w2_p, b2_p)

    return out2d[:M, :dim].reshape(B, N, dim)


def init_params(key, dim, hidden_dim, dtype=jnp.float32):
    # Mimics nn.Linear's U(-1/sqrt(fan_in), 1/sqrt(fan_in)); weights stored (in, out).
    k1, k2, k3, k4 = jax.random.split(key, 4)
    lim1 = 1.0 / (dim ** 0.5)
    lim2 = 1.0 / (hidden_dim ** 0.5)
    w1 = jax.random.uniform(k1, (dim, hidden_dim), dtype, -lim1, lim1)
    b1 = jax.random.uniform(k2, (hidden_dim,), dtype, -lim1, lim1)
    w2 = jax.random.uniform(k3, (hidden_dim, dim), dtype, -lim2, lim2)
    b2 = jax.random.uniform(k4, (dim,), dtype, -lim2, lim2)
    return w1, b1, w2, b2


def pre_norm_feed_forward_ref(x, gamma, beta, w1, b1, w2, b2, eps=1e-5):
    mean = jnp.mean(x, axis=-1, keepdims=True)
    var = jnp.mean((x - mean) ** 2, axis=-1, keepdims=True)
    xn = (x - mean) / jnp.sqrt(var + eps) * gamma + beta
    h = jnp.einsum("bnd,dh->bnh", xn, w1) + b1
    h = h * jax.nn.sigmoid(h)
    return jnp.einsum("bnh,hd->bnd", h, w2) + b2


if __name__ == "__main__":
    B, N, dim, hidden_dim = 2, 8, 32, 64
    key = jax.random.PRNGKey(0)
    kx, kp = jax.random.split(key)
    x = jax.random.normal(kx, (B, N, dim), jnp.float32)
    gamma = jnp.ones((dim,), jnp.float32)   # nn.LayerNorm default affine init
    beta = jnp.zeros((dim,), jnp.float32)
    w1, b1, w2, b2 = init_params(kp, dim, hidden_dim)

    out = pre_norm_feed_forward(x, gamma, beta, w1, b1, w2, b2)
    out = jax.block_until_ready(out)

    ref = pre_norm_feed_forward_ref(x, gamma, beta, w1, b1, w2, b2)
    assert out.shape == (B, N, dim)
    # Tolerance accounts for the EUP approximate reciprocal in the SiLU sigmoid.
    max_err = float(jnp.max(jnp.abs(out - ref)))
    assert jnp.allclose(out, ref, atol=5e-3, rtol=5e-3), f"max abs err {max_err}"

    print("KERNEL_OK")
</pallas_src>

<mosaic_0001>
module attributes {stable_mosaic.version = 11 : i64} {
  func.func @_prenorm_ffn_kernel(%arg0: i32, %arg1: memref<16x128xf32, #tpu.memory_space<vmem>>, %arg2: memref<1x128xf32, #tpu.memory_space<vmem>>, %arg3: memref<1x128xf32, #tpu.memory_space<vmem>>, %arg4: memref<128x128xf32, #tpu.memory_space<vmem>>, %arg5: memref<1x128xf32, #tpu.memory_space<vmem>>, %arg6: memref<128x128xf32, #tpu.memory_space<vmem>>, %arg7: memref<1x128xf32, #tpu.memory_space<vmem>>, %arg8: memref<16x128xf32, #tpu.memory_space<vmem>>) attributes {dimension_semantics = [#tpu.dimension_semantics<parallel>], iteration_bounds = array<i64: 1>, scalar_prefetch = 0 : i64, scratch_operands = 0 : i64, tpu.core_type = #tpu.core_type<tc>, window_params = [{transform_indices = @transform_0, window_bounds = array<i64: 16, 128>}, {pipeline_mode = #tpu.pipeline_mode<synchronous>, transform_indices = @transform_1, window_bounds = array<i64: 1, 128>}, {pipeline_mode = #tpu.pipeline_mode<synchronous>, transform_indices = @transform_2, window_bounds = array<i64: 1, 128>}, {pipeline_mode = #tpu.pipeline_mode<synchronous>, transform_indices = @transform_3, window_bounds = array<i64: 128, 128>}, {pipeline_mode = #tpu.pipeline_mode<synchronous>, transform_indices = @transform_4, window_bounds = array<i64: 1, 128>}, {pipeline_mode = #tpu.pipeline_mode<synchronous>, transform_indices = @transform_5, window_bounds = array<i64: 128, 128>}, {pipeline_mode = #tpu.pipeline_mode<synchronous>, transform_indices = @transform_6, window_bounds = array<i64: 1, 128>}, {transform_indices = @transform_7, window_bounds = array<i64: 16, 128>}]} {
    %c0 = arith.constant 0 : index
    %c0_0 = arith.constant 0 : index
    %0 = vector.load %arg1[%c0, %c0_0] : memref<16x128xf32, #tpu.memory_space<vmem>>, vector<16x128xf32>
    %cst = arith.constant dense<0.000000e+00> : vector<16xf32>
    %1 = vector.multi_reduction <add>, %0, %cst [1] : vector<16x128xf32> to vector<16xf32>
    %2 = vector.shape_cast %1 : vector<16xf32> to vector<16x1xf32>
    %cst_1 = arith.constant 3.125000e-02 : f32
    %3 = vector.broadcast %cst_1 : f32 to vector<16x1xf32>
    %4 = arith.mulf %2, %3 : vector<16x1xf32>
    %5 = arith.mulf %0, %0 : vector<16x128xf32>
    %cst_2 = arith.constant dense<0.000000e+00> : vector<16xf32>
    %6 = vector.multi_reduction <add>, %5, %cst_2 [1] : vector<16x128xf32> to vector<16xf32>
    %7 = vector.shape_cast %6 : vector<16xf32> to vector<16x1xf32>
    %cst_3 = arith.constant 3.125000e-02 : f32
    %8 = vector.broadcast %cst_3 : f32 to vector<16x1xf32>
    %9 = arith.mulf %7, %8 : vector<16x1xf32>
    %10 = arith.mulf %4, %4 : vector<16x1xf32>
    %11 = arith.subf %9, %10 : vector<16x1xf32>
    %12 = vector.broadcast %4 : vector<16x1xf32> to vector<16x128xf32>
    %13 = arith.subf %0, %12 : vector<16x128xf32>
    %cst_4 = arith.constant 9.99999974E-6 : f32
    %14 = vector.broadcast %cst_4 : f32 to vector<16x1xf32>
    %15 = arith.addf %11, %14 : vector<16x1xf32>
    %16 = math.rsqrt %15 : vector<16x1xf32>
    %17 = vector.broadcast %16 : vector<16x1xf32> to vector<16x128xf32>
    %18 = arith.mulf %13, %17 : vector<16x128xf32>
    %c0_5 = arith.constant 0 : index
    %c0_6 = arith.constant 0 : index
    %19 = vector.load %arg2[%c0_5, %c0_6] : memref<1x128xf32, #tpu.memory_space<vmem>>, vector<1x128xf32>
    %20 = vector.broadcast %19 : vector<1x128xf32> to vector<16x128xf32>
    %21 = arith.mulf %18, %20 : vector<16x128xf32>
    %c0_7 = arith.constant 0 : index
    %c0_8 = arith.constant 0 : index
    %22 = vector.load %arg3[%c0_7, %c0_8] : memref<1x128xf32, #tpu.memory_space<vmem>>, vector<1x128xf32>
    %23 = vector.broadcast %22 : vector<1x128xf32> to vector<16x128xf32>
    %24 = arith.addf %21, %23 : vector<16x128xf32>
    %c0_9 = arith.constant 0 : index
    %c0_10 = arith.constant 0 : index
    %25 = vector.load %arg4[%c0_9, %c0_10] : memref<128x128xf32, #tpu.memory_space<vmem>>, vector<128x128xf32>
    %cst_11 = arith.constant dense<0.000000e+00> : vector<16x128xf32>
    %26 = tpu.matmul %24, %25, %cst_11 {dimension_numbers = #tpu.dot_dimension_numbers<[1], [0], [0], [1], [0, 0, 1, 1], [], []>} : vector<16x128xf32>, vector<128x128xf32>, vector<16x128xf32> -> vector<16x128xf32>
    %c0_12 = arith.constant 0 : index
    %c0_13 = arith.constant 0 : index
    %27 = vector.load %arg5[%c0_12, %c0_13] : memref<1x128xf32, #tpu.memory_space<vmem>>, vector<1x128xf32>
    %28 = vector.broadcast %27 : vector<1x128xf32> to vector<16x128xf32>
    %29 = arith.addf %26, %28 : vector<16x128xf32>
    %cst_14 = arith.constant 0.000000e+00 : f32
    %30 = vector.broadcast %cst_14 : f32 to vector<16x128xf32>
    %31 = arith.subf %30, %29 : vector<16x128xf32>
    %32 = math.exp %31 : vector<16x128xf32>
    %cst_15 = arith.constant 1.000000e+00 : f32
    %33 = vector.broadcast %cst_15 : f32 to vector<16x128xf32>
    %34 = arith.addf %33, %32 : vector<16x128xf32>
    %35 = tpu.reciprocal %34 {approx = true} : vector<16x128xf32> -> vector<16x128xf32>
    %36 = arith.mulf %29, %35 : vector<16x128xf32>
    %c0_16 = arith.constant 0 : index
    %c0_17 = arith.constant 0 : index
    %37 = vector.load %arg6[%c0_16, %c0_17] : memref<128x128xf32, #tpu.memory_space<vmem>>, vector<128x128xf32>
    %cst_18 = arith.constant dense<0.000000e+00> : vector<16x128xf32>
    %38 = tpu.matmul %36, %37, %cst_18 {dimension_numbers = #tpu.dot_dimension_numbers<[1], [0], [0], [1], [0, 0, 1, 1], [], []>} : vector<16x128xf32>, vector<128x128xf32>, vector<16x128xf32> -> vector<16x128xf32>
    %c0_19 = arith.constant 0 : index
    %c0_20 = arith.constant 0 : index
    %39 = vector.load %arg7[%c0_19, %c0_20] : memref<1x128xf32, #tpu.memory_space<vmem>>, vector<1x128xf32>
    %40 = vector.broadcast %39 : vector<1x128xf32> to vector<16x128xf32>
    %41 = arith.addf %38, %40 : vector<16x128xf32>
    %c0_21 = arith.constant 0 : index
    %c0_22 = arith.constant 0 : index
    %42 = vector.load %arg8[%c0_21, %c0_22] : memref<16x128xf32, #tpu.memory_space<vmem>>, vector<16x128xf32>
    tpu.vector_store %arg8[%c0_21, %c0_22], %41 {strides = array<i32>} : memref<16x128xf32, #tpu.memory_space<vmem>>, vector<16x128xf32>,
    return
  }
  func.func @transform_0(%arg0: i32) -> (i32, i32) {
    %c0_i32 = arith.constant 0 : i32
    %c0_i32_0 = arith.constant 0 : i32
    return %arg0, %c0_i32 : i32, i32
  }
  func.func @transform_1(%arg0: i32) -> (i32, i32) {
    %c0_i32 = arith.constant 0 : i32
    %c0_i32_0 = arith.constant 0 : i32
    %c0_i32_1 = arith.constant 0 : i32
    return %c0_i32, %c0_i32_0 : i32, i32
  }
  func.func @transform_2(%arg0: i32) -> (i32, i32) {
    %c0_i32 = arith.constant 0 : i32
    %c0_i32_0 = arith.constant 0 : i32
    %c0_i32_1 = arith.constant 0 : i32
    return %c0_i32, %c0_i32_0 : i32, i32
  }
  func.func @transform_3(%arg0: i32) -> (i32, i32) {
    %c0_i32 = arith.constant 0 : i32
    %c0_i32_0 = arith.constant 0 : i32
    %c0_i32_1 = arith.constant 0 : i32
    return %c0_i32, %c0_i32_0 : i32, i32
  }
  func.func @transform_4(%arg0: i32) -> (i32, i32) {
    %c0_i32 = arith.constant 0 : i32
    %c0_i32_0 = arith.constant 0 : i32
    %c0_i32_1 = arith.constant 0 : i32
    return %c0_i32, %c0_i32_0 : i32, i32
  }
  func.func @transform_5(%arg0: i32) -> (i32, i32) {
    %c0_i32 = arith.constant 0 : i32
    %c0_i32_0 = arith.constant 0 : i32
    %c0_i32_1 = arith.constant 0 : i32
    return %c0_i32, %c0_i32_0 : i32, i32
  }
  func.func @transform_6(%arg0: i32) -> (i32, i32) {
    %c0_i32 = arith.constant 0 : i32
    %c0_i32_0 = arith.constant 0 : i32
    %c0_i32_1 = arith.constant 0 : i32
    return %c0_i32, %c0_i32_0 : i32, i32
  }
  func.func @transform_7(%arg0: i32) -> (i32, i32) {
    %c0_i32 = arith.constant 0 : i32
    %c0_i32_0 = arith.constant 0 : i32
    return %arg0, %c0_i32 : i32, i32
  }
}

</mosaic_0001>

<bundles_post_ra>
// kernel: pre_norm_feed_forward.1
= control target key start
LH: loop header
LB: loop body
LE: loop exit
PB: predicated region body
PF: predicated region fallthrough
CT: control target
= control target key end

     0   :  { %s580_s0 = inlined_call_operand.vmem [shape: f32[16,128], index: 0, kind: input, shape index: {}]   ;;  %s581_s3 = inlined_call_operand.vmem [shape: f32[128,128], index: 3, kind: input, shape index: {}]   ;;  %s582_s1 = inlined_call_operand.vmem [shape: f32[1,128], index: 1, kind: input, shape index: {}]   ;;  %s583_s2 = inlined_call_operand.vmem [shape: f32[1,128], index: 2, kind: input, shape index: {}]   ;;  %s584_s5 = inlined_call_operand.vmem [shape: f32[128,128], index: 5, kind: input, shape index: {}]   ;;  %s585_s4 = inlined_call_operand.vmem [shape: f32[1,128], index: 4, kind: input, shape index: {}]   ;;  %s586_s6 = inlined_call_operand.vmem [shape: f32[1,128], index: 6, kind: input, shape index: {}]   ;;  %s587_s7 = inlined_call_operand.vmem [shape: f32[16,128], index: 7, kind: output, shape index: {}]  }
   0x1   :  { %v451_v0 = vld [vmem:[%s580_s0] sm:$0xff]  ;;  %v456_v1 = vld [vmem:[%s580_s0 + $0x8] sm:$0xff]  ;;  %v87_v4 = vld [vmem:[%s581_s3 + $0x78] sm:$0xff] }
   0x2   :  { %28 = vadd.xlane.f32.xlu0 %v451_v0  ;;  %v34_v2 = vmul.f32 %v451_v0, %v451_v0  ;;  %v35_v3 = vmul.f32 %v456_v1, %v456_v1  ;;  %326 = vmatprep.subr.mxu0 %v87_v4  ;;  %v86_v5 = vld [vmem:[%s581_s3 + $0x70] sm:$0xff]  ;;  %v85_v6 = vld [vmem:[%s581_s3 + $0x68] sm:$0xff]  ;;  %v84_v7 = vld [vmem:[%s581_s3 + $0x60] sm:$0xff] }
   0x3   :  { %327 = vmatpush3.msra.mxu0 %v87_v4  ;;  %v83_v8 = vld [vmem:[%s581_s3 + $0x58] sm:$0xff]  ;;  %v82_v9 = vld [vmem:[%s581_s3 + $0x50] sm:$0xff]  ;;  %v81_v10 = vld [vmem:[%s581_s3 + $0x48] sm:$0xff] }
   0x4   :  { %36 = vadd.xlane.f32.xlu1 %v34_v2  ;;  %328 = vmatprep.subr.mxu0 %v86_v5  ;;  %v80_v11 = vld [vmem:[%s581_s3 + $0x40] sm:$0xff]  ;;  %v79_v12 = vld [vmem:[%s581_s3 + $0x38] sm:$0xff]  ;;  %v78_v13 = vld [vmem:[%s581_s3 + $0x30] sm:$0xff] }
   0x5   :  { %329 = vmatpush3.msra.mxu0 %v86_v5  ;;  %v77_v14 = vld [vmem:[%s581_s3 + $0x28] sm:$0xff]  ;;  %v76_v15 = vld [vmem:[%s581_s3 + $0x20] sm:$0xff]  ;;  %v75_v16 = vld [vmem:[%s581_s3 + $0x18] sm:$0xff] }
   0x6   :  { %30 = vadd.xlane.f32.xlu0 %v456_v1  ;;  %330 = vmatprep.subr.mxu0 %v85_v6  ;;  %v74_v17 = vld [vmem:[%s581_s3 + $0x10] sm:$0xff]  ;;  %v73_v18 = vld [vmem:[%s581_s3 + $0x8] sm:$0xff]  ;;  %v72_v19 = vld [vmem:[%s581_s3] sm:$0xff] }
   0x7   :  { %331 = vmatpush3.msra.mxu0 %v85_v6  ;;  %v286_v36 = vld [vmem:[%s582_s1] ss:$0 sm:$0xff]  ;;  %v197_v46 = vld [vmem:[%s584_s5 + $0x78] sm:$0xff]  ;;  %v196_v47 = vld [vmem:[%s584_s5 + $0x70] sm:$0xff] }
   0x8   :  { %38 = vadd.xlane.f32.xlu1 %v35_v3  ;;  %332 = vmatprep.subr.mxu0 %v84_v7  ;;  %v287_v38 = vld [vmem:[%s583_s2] ss:$0 sm:$0xff]  ;;  %v195_v48 = vld [vmem:[%s584_s5 + $0x68] sm:$0xff]  ;;  %v193_v50 = vld [vmem:[%s584_s5 + $0x58] sm:$0xff] }
   0x9   :  { %333 = vmatpush3.msra.mxu0 %v84_v7  ;;  %361 = vmatprep.subr.mxu1 %v197_v46  ;;  %v194_v49 = vld [vmem:[%s584_s5 + $0x60] sm:$0xff]  ;;  %v192_v51 = vld [vmem:[%s584_s5 + $0x50] sm:$0xff]  ;;  %v191_v52 = vld [vmem:[%s584_s5 + $0x48] sm:$0xff] }
   0xa   :  { %334 = vmatprep.subr.mxu0 %v83_v8  ;;  %362 = vmatpush3.msra.mxu1 %v197_v46  ;;  %v190_v53 = vld [vmem:[%s584_s5 + $0x40] sm:$0xff]  ;;  %v189_v54 = vld [vmem:[%s584_s5 + $0x38] sm:$0xff]  ;;  %v188_v55 = vld [vmem:[%s584_s5 + $0x30] sm:$0xff] }
   0xb   :  { %335 = vmatpush3.msra.mxu0 %v83_v8  ;;  %363 = vmatprep.subr.mxu1 %v196_v47  ;;  %v187_v56 = vld [vmem:[%s584_s5 + $0x28] sm:$0xff]  ;;  %v186_v57 = vld [vmem:[%s584_s5 + $0x20] sm:$0xff]  ;;  %v185_v58 = vld [vmem:[%s584_s5 + $0x18] sm:$0xff] }
   0xc   :  { %336 = vmatprep.subr.mxu0 %v82_v9  ;;  %364 = vmatpush3.msra.mxu1 %v196_v47  ;;  %v184_v59 = vld [vmem:[%s584_s5 + $0x10] sm:$0xff]  ;;  %v183_v60 = vld [vmem:[%s584_s5 + $0x8] sm:$0xff]  ;;  %v182_v61 = vld [vmem:[%s584_s5] sm:$0xff] }
   0xd   :  { %337 = vmatpush3.msra.mxu0 %v82_v9  ;;  %365 = vmatprep.subr.mxu1 %v195_v48  ;;  %v288_v62 = vld [vmem:[%s585_s4] ss:$0 sm:$0xff] }
   0xe   :  { %338 = vmatprep.subr.mxu0 %v81_v10  ;;  %366 = vmatpush3.msra.mxu1 %v195_v48 }
   0xf   :  { %339 = vmatpush3.msra.mxu0 %v81_v10  ;;  %367 = vmatprep.subr.mxu1 %v194_v49 }
  0x10   :  { %340 = vmatprep.subr.mxu0 %v80_v11  ;;  %368 = vmatpush3.msra.mxu1 %v194_v49 }
  0x11   :  { %341 = vmatpush3.msra.mxu0 %v80_v11  ;;  %369 = vmatprep.subr.mxu1 %v193_v50 }
  0x12   :  { %342 = vmatprep.subr.mxu0 %v79_v12  ;;  %370 = vmatpush3.msra.mxu1 %v193_v50 }
  0x13   :  { %343 = vmatpush3.msra.mxu0 %v79_v12  ;;  %371 = vmatprep.subr.mxu1 %v192_v51 }
  0x14   :  { %344 = vmatprep.subr.mxu0 %v78_v13  ;;  %372 = vmatpush3.msra.mxu1 %v192_v51 }
  0x15   :  { %345 = vmatpush3.msra.mxu0 %v78_v13  ;;  %373 = vmatprep.subr.mxu1 %v191_v52 }
  0x16   :  { %346 = vmatprep.subr.mxu0 %v77_v14  ;;  %374 = vmatpush3.msra.mxu1 %v191_v52 }
  0x17   :  { %347 = vmatpush3.msra.mxu0 %v77_v14  ;;  %375 = vmatprep.subr.mxu1 %v190_v53 }
  0x18   :  { %348 = vmatprep.subr.mxu0 %v76_v15  ;;  %376 = vmatpush3.msra.mxu1 %v190_v53 }
  0x19   :  { %349 = vmatpush3.msra.mxu0 %v76_v15  ;;  %377 = vmatprep.subr.mxu1 %v189_v54  ;;  %v289_v15 = vld [vmem:[%s586_s6] ss:$0 sm:$0xff] }
  0x1a   :  { %350 = vmatprep.subr.mxu0 %v75_v16  ;;  %378 = vmatpush3.msra.mxu1 %v189_v54 }
  0x1b   :  { %351 = vmatpush3.msra.mxu0 %v75_v16  ;;  %379 = vmatprep.subr.mxu1 %v188_v55 }
  0x1c   :  { %352 = vmatprep.subr.mxu0 %v74_v17  ;;  %380 = vmatpush3.msra.mxu1 %v188_v55 }
  0x1d   :  { %353 = vmatpush3.msra.mxu0 %v74_v17  ;;  %381 = vmatprep.subr.mxu1 %v187_v56 }
  0x1e   :  { %354 = vmatprep.subr.mxu0 %v73_v18  ;;  %382 = vmatpush3.msra.mxu1 %v187_v56 }
  0x1f   :  { %355 = vmatpush3.msra.mxu0 %v73_v18  ;;  %383 = vmatprep.subr.mxu1 %v186_v57 }
  0x20   :  { %356 = vmatprep.subr.mxu0 %v72_v19  ;;  %384 = vmatpush3.msra.mxu1 %v186_v57 }
  0x21   :  { %357 = vmatpush3.msra.mxu0 %v72_v19  ;;  %385 = vmatprep.subr.mxu1 %v185_v58 }
  0x22   :  { %386 = vmatpush3.msra.mxu1 %v185_v58 }
  0x23   :  { %387 = vmatprep.subr.mxu1 %v184_v59 }
  0x24   :  { %388 = vmatpush3.msra.mxu1 %v184_v59 }
  0x25   :  { %389 = vmatprep.subr.mxu1 %v183_v60 }
  0x26   :  { %390 = vmatpush3.msra.mxu1 %v183_v60 }
  0x27   :  { %391 = vmatprep.subr.mxu1 %v182_v61 }
  0x28   :  { %392 = vmatpush3.msra.mxu1 %v182_v61 }
  0x8b   :  { %v29_v20 = vpop.xlane.xlu0 %28 }
  0x8c   :  { %v32_v21 = vmul.f32 0.03125, %v29_v20 }
  0x8d   :  { %v37_v22 = vpop.xlane.xlu1 %36 }
  0x8e   :  { %v42_v23 = vmul.f32 %v32_v21, %v32_v21  ;;  %v40_v24 = vmul.f32 0.03125, %v37_v22  ;;  %v46_v34 = vsub.f32 %v451_v0, %v32_v21 }
  0x8f   :  { %v31_v25 = vpop.xlane.xlu0 %30 }
  0x90   :  { %v44_v26 = vsub.f32 %v40_v24, %v42_v23  ;;  %v33_v27 = vmul.f32 0.03125, %v31_v25 }
  0x91   :  { %v39_v28 = vpop.xlane.xlu1 %38 }
  0x92   :  { %v48_v29 = vadd.f32 1e-05, %v44_v26  ;;  %v43_v30 = vmul.f32 %v33_v27, %v33_v27  ;;  %v41_v31 = vmul.f32 0.03125, %v39_v28  ;;  %v47_v39 = vsub.f32 %v456_v1, %v33_v27 }
  0x94   :  { %396 = vrsqrt.f32 %v48_v29  ;;  %v45_v32 = vsub.f32 %v41_v31, %v43_v30 }
  0x96   :  { %v49_v33 = vadd.f32 1e-05, %v45_v32 }
  0x98   :  { %398 = vrsqrt.f32 %v49_v33 }
  0xa1   :  { %v397_v35 = vpop.eup %396 }
  0xa2   :  { %v52_v37 = vmul.f32 %v397_v35, %v46_v34 }
  0xa4   :  { %v61_v40 = vmul.f32 %v286_v36, %v52_v37 }
  0xa5   :  { %v399_v41 = vpop.eup %398 }
  0xa6   :  { %v53_v42 = vmul.f32 %v399_v41, %v47_v39  ;;  %v70_v43 = vadd.f32 %v287_v38, %v61_v40 }
  0xa8   :  { %v62_v44 = vmul.f32 %v286_v36, %v53_v42  ;;  %358 = vmatprep.mubr.f32.mxu0 %v70_v43 }
  0xaa   :  { %v71_v45 = vadd.f32 %v287_v38, %v62_v44 }
  0xac   :  { %359 = vmatmul.mubr.f32.vlgmr.msra.gmra.mxu0 %v71_v45 }
 0x16c   :  { %v360_v63 = vpop.f32.mrf.mxu0 }
 0x16d   :  { %v167_v0 = vadd.f32 %v360_v63, %v288_v62 }
 0x16e   :  { %v161_v1 = vpop.f32.mrf.mxu0 }
 0x16f   :  { %v171_v2 = vsub.f32 0.0, %v167_v0  ;;  %v162_v3 = vadd.f32 %v288_v62, %v161_v1 }
 0x171   :  { %v174_v4 = vmul.f32 1.442695, %v171_v2  ;;  %v170_v5 = vsub.f32 0.0, %v162_v3 }
 0x173   :  { %400 = vpow2.f32 %v174_v4  ;;  %v172_v6 = vmul.f32 1.442695, %v170_v5 }
 0x175   :  { %402 = vpow2.f32 %v172_v6 }
 0x180   :  { %v401_v7 = vpop.eup %400 }
 0x181   :  { %v177_v8 = vadd.f32 1.0, %v401_v7 }
 0x182   :  { %v403_v9 = vpop.eup %402 }
 0x183   :  { %v176_v10 = vadd.f32 1.0, %v403_v9  ;;  %404 = vrcp.f32 %v177_v8 }
 0x185   :  { %406 = vrcp.f32 %v176_v10 }
 0x190   :  { %v405_v11 = vpop.eup %404 }
 0x191   :  { %v181_v14 = vmul.f32 %v405_v11, %v167_v0 }
 0x192   :  { %v407_v12 = vpop.eup %406 }
 0x193   :  { %v180_v13 = vmul.f32 %v407_v12, %v162_v3 }
 0x195   :  { %393 = vmatprep.mubr.f32.mxu1 %v180_v13 }
 0x196   :  { %394 = vmatmul.mubr.f32.vlgmr.msra.gmra.mxu1 %v181_v14 }
 0x256   :  { %v395_v16 = vpop.f32.mrf.mxu1 }
 0x257   :  { %v277_v17 = vadd.f32 %v395_v16, %v289_v15 }
 0x258   :  { %v271_v18 = vpop.f32.mrf.mxu1 }
 0x259   :  { %281 = vst [vmem:[%s587_s7 + $0x8] sm:$0xff] %v277_v17  ;;  %v272_v19 = vadd.f32 %v289_v15, %v271_v18 }
 0x25b   :  { %280 = vst [vmem:[%s587_s7] sm:$0xff] %v272_v19 }

</bundles_post_ra>
